<compile_context>
chip_gen: v7x
topology: tpu7x:2x2x1
jax: 0.10.0
libtpu: 0.0.40
codegen_flags: <defaults>
</compile_context>

<pallas_src>
import jax
import jax.numpy as jnp
from jax.experimental import pallas as pl
from jax.experimental.pallas import tpu as pltpu


# ---------------------------------------------------------------------------
# Fused two-layer kernel
# ---------------------------------------------------------------------------
def _digcn_fused_kernel(a_ref, x_ref, w1_ref, w2_ref, o_ref, h_ref):
    # Grid: (phase, row-tile).  phase 0 = layer 1 (fills h scratch),
    # phase 1 = layer 2 (writes output tiles).  Phase axis is slowest.
    phase = pl.program_id(0)
    i = pl.program_id(1)
    tm = o_ref.shape[0]
    row = pl.multiple_of(i * tm, tm)

    @pl.when(phase == 0)
    def _():
        # Layer 1 for this A row tile: h_rows = relu((A_rows @ x) @ W1)
        t = jnp.dot(a_ref[...], x_ref[...],
                    preferred_element_type=jnp.float32)           # f32 acc
        h = jnp.dot(t.astype(jnp.bfloat16), w1_ref[...],
                    preferred_element_type=jnp.float32)
        h = jnp.maximum(h, 0.0)                                   # ReLU in f32
        h_ref[pl.ds(row, tm), :] = h.astype(h_ref.dtype)
        # NOTE: o_ref is intentionally NOT written in phase 0.  Its block
        # index is constant (0) across phase 0 and is only flushed to HBM
        # after phase 1 overwrites it with real data.

    @pl.when(phase == 1)
    def _():
        # Layer 2 for this A row tile: out_rows = (A_rows @ h) @ W2
        u = jnp.dot(a_ref[...], h_ref[...],
                    preferred_element_type=jnp.float32)
        out = jnp.dot(u.astype(jnp.bfloat16), w2_ref[...],
                      preferred_element_type=jnp.float32)
        o_ref[...] = out.astype(o_ref.dtype)


def _round_up(v, m):
    return (v + m - 1) // m * m


def _pad2d(a, rows, cols):
    return jnp.pad(a, ((0, rows - a.shape[0]), (0, cols - a.shape[1])))


def _physical_vmem_bytes():
    try:
        return int(pltpu.get_tpu_info().vmem_capacity_bytes)
    except Exception:
        return 64 * 1024 * 1024  # conservative (v7x per-TensorCore) fallback


def digcn_fused(a, x, w1, w2, *, tm=256):
    """Fused DiGCN forward: A @ (relu(A @ (x @ W1)) @ W2), f32 out.

    tm: output row-tile size.  256 fills the v6e/v7x MXU; use 128 on v5e.
    """
    n, f_in = x.shape
    f_hid = w1.shape[1]
    assert w1.shape[0] == f_in and w2.shape == (f_hid, f_hid)

    # Pad all lane (last) dims to multiples of 128 -> unmasked full-width
    # stores and full-width MXU work.
    n_p = _round_up(n, 128)
    f_p = _round_up(f_in, 128)
    h_p = _round_up(f_hid, 128)

    tm = min(tm, n_p)
    if n_p % tm != 0:
        tm = 128                      # n_p is always a multiple of 128
    assert n_p % tm == 0 and tm % 128 == 0
    n_tiles = n_p // tm

    a_p = _pad2d(a, n_p, n_p).astype(jnp.bfloat16)
    x_p = _pad2d(x, n_p, f_p).astype(jnp.bfloat16)
    w1_p = _pad2d(w1, f_p, h_p).astype(jnp.bfloat16)
    w2_p = _pad2d(w2, h_p, h_p).astype(jnp.bfloat16)

    # --- VMEM budget (double-buffered pipelined A tiles, resident x/W1/W2,
    # persistent h scratch, double-buffered f32 output tiles) ---------------
    bf16 = 2
    needed = (2 * tm * n_p * bf16          # A row tiles (2 buffers)
              + 2 * n_p * f_p * bf16       # x (constant index; budget 2 bufs)
              + 2 * f_p * h_p * bf16       # W1
              + 2 * h_p * h_p * bf16       # W2
              + n_p * h_p * bf16           # h scratch (layer-1 activation)
              + 2 * tm * h_p * 4)          # output tiles (f32, 2 buffers)
    phys = _physical_vmem_bytes()
    vmem_limit = min(max(needed + (8 << 20), 32 << 20), phys - (8 << 20))

    # --- Cost estimate consistent with the final layout ---------------------
    flops = (2 * n_p * n_p * f_p + 2 * n_p * f_p * h_p      # layer 1
             + 2 * n_p * n_p * h_p + 2 * n_p * h_p * h_p)   # layer 2
    bytes_accessed = (2 * n_p * n_p * bf16                   # A read twice
                      + n_p * f_p * bf16                     # x
                      + f_p * h_p * bf16 + h_p * h_p * bf16  # W1, W2
                      + n_p * h_p * 4)                       # out written once

    out_p = pl.pallas_call(
        _digcn_fused_kernel,
        out_shape=jax.ShapeDtypeStruct((n_p, h_p), jnp.float32),
        grid_spec=pltpu.PrefetchScalarGridSpec(
            num_scalar_prefetch=0,
            grid=(2, n_tiles),            # (phase, row tile); phase slowest
            in_specs=[
                # A: row-tiled, pipelined/double-buffered by Pallas.
                pl.BlockSpec((tm, n_p), lambda p, i: (i, 0)),
                # x, W1, W2: constant block index -> DMA'd once, resident.
                pl.BlockSpec((n_p, f_p), lambda p, i: (0, 0)),
                pl.BlockSpec((f_p, h_p), lambda p, i: (0, 0)),
                pl.BlockSpec((h_p, h_p), lambda p, i: (0, 0)),
            ],
            # Phase 0 maps every step to output block 0 (never written, never
            # flushed); phase 1 visits each block once and writes real data.
            out_specs=pl.BlockSpec((tm, h_p), lambda p, i: (p * i, 0)),
            scratch_shapes=[pltpu.VMEM((n_p, h_p), jnp.bfloat16)],  # h
        ),
        compiler_params=pltpu.CompilerParams(
            # Phase 1 consumes the full h scratch produced by phase 0, so both
            # axes must stay sequential ("arbitrary").
            # TODO(synk): on v7x, shard the row-tile axis across the 2 TCs
            # (two pallas_calls with h via HBM, or core_map + VMEM_SHARED h
            # with a pltpu.core_barrier between the phases).
            dimension_semantics=("arbitrary", "arbitrary"),
            vmem_limit_bytes=int(vmem_limit),
        ),
        cost_estimate=pl.CostEstimate(
            flops=flops, transcendentals=0, bytes_accessed=bytes_accessed),
    )(a_p, x_p, w1_p, w2_p)

    return out_p[:n, :f_hid]


# ---------------------------------------------------------------------------
# Plain-JAX glue (matches the PyTorch module's surrounding code)
# ---------------------------------------------------------------------------
def glorot(key, fan_in, fan_out):
    # torch_geometric.nn.inits.glorot: U(-s, s), s = sqrt(6/(fan_in+fan_out))
    s = jnp.sqrt(6.0 / (fan_in + fan_out))
    return jax.random.uniform(key, (fan_in, fan_out),
                              minval=-s, maxval=s, dtype=jnp.float32)


def dense_adjacency(edge_index, edge_attr, num_nodes):
    # A[dst, src] += norm  (PyG flow source_to_target, aggr='add')
    # TODO(synk): for large sparse graphs, replace the dense A with a
    # block-sparse layout + PrefetchScalarGridSpec so all-zero A tiles are
    # skipped instead of multiplied.
    src, dst = edge_index[0], edge_index[1]
    a = jnp.zeros((num_nodes, num_nodes), dtype=jnp.float32)
    return a.at[dst, src].add(edge_attr)


def digcn_forward(x, edge_index, edge_attr, g_node_list, w1, w2):
    """DiGCN.forward: fused conv1+relu+conv2 kernel, then per-graph split.

    The per-graph split (x[g_node_list == g]) is dynamic-shaped host glue,
    matching the Python loop in the reference module; it intentionally lives
    outside the kernel.
    """
    a = dense_adjacency(edge_index, edge_attr, x.shape[0])
    h = digcn_fused(a, x, w1, w2)
    g_host = jax.device_get(g_node_list)
    num_graphs = int(len(set(g_host.tolist())))
    return [h[g_node_list == g] for g in range(num_graphs)]


# ---------------------------------------------------------------------------
if __name__ == "__main__":
    key = jax.random.PRNGKey(0)
    k_x, k_s, k_d, k_ea, k_w1, k_w2 = jax.random.split(key, 6)

    # Small, module-consistent shapes: N nodes, nfeat features, nhid hidden.
    num_nodes, nfeat, nhid, num_edges = 32, 16, 32, 96

    x = jax.random.normal(k_x, (num_nodes, nfeat), dtype=jnp.float32)
    src = jax.random.randint(k_s, (num_edges,), 0, num_nodes, dtype=jnp.int32)
    dst = jax.random.randint(k_d, (num_edges,), 0, num_nodes, dtype=jnp.int32)
    edge_index = jnp.stack([src, dst], axis=0)                        # [2, E]
    edge_attr = jax.random.uniform(k_ea, (num_edges,), dtype=jnp.float32)  # [E]
    g_node_list = jnp.concatenate(
        [jnp.zeros(num_nodes // 2, jnp.int32),
         jnp.ones(num_nodes // 2, jnp.int32)])

    # Deterministic glorot weights (bias=False in DIGCNConv defaults)
    w1 = glorot(k_w1, nfeat, nhid)
    w2 = glorot(k_w2, nhid, nhid)

    # Run fused kernel once and verify against a pure-f32 JAX reference
    # (generous tolerance: MXU inputs are bf16, accumulation is f32).
    a = dense_adjacency(edge_index, edge_attr, num_nodes)
    out = digcn_fused(a, x, w1, w2)
    jax.block_until_ready(out)
    ref = a @ (jnp.maximum(a @ (x @ w1), 0.0) @ w2)
    assert out.shape == (num_nodes, nhid)
    assert bool(jnp.allclose(out, ref, rtol=1e-1, atol=1e-1)), \
        float(jnp.max(jnp.abs(out - ref)))

    # Full module forward (kernel + per-graph split glue)
    emb_list = digcn_forward(x, edge_index, edge_attr, g_node_list, w1, w2)
    for emb in emb_list:
        jax.block_until_ready(emb)
    assert emb_list[0].shape == (num_nodes // 2, nhid)
    assert emb_list[1].shape == (num_nodes // 2, nhid)

    print("KERNEL_OK")
</pallas_src>

<mosaic_0001>
module attributes {stable_mosaic.version = 11 : i64} {
  func.func @_digcn_fused_kernel(%arg0: i32, %arg1: i32, %arg2: memref<128x128xbf16, #tpu.memory_space<vmem>>, %arg3: memref<128x128xbf16, #tpu.memory_space<vmem>>, %arg4: memref<128x128xbf16, #tpu.memory_space<vmem>>, %arg5: memref<128x128xbf16, #tpu.memory_space<vmem>>, %arg6: memref<128x128xf32, #tpu.memory_space<vmem>>, %arg7: memref<128x128xbf16, #tpu.memory_space<vmem>>) attributes {dimension_semantics = [#tpu.dimension_semantics<arbitrary>, #tpu.dimension_semantics<arbitrary>], iteration_bounds = array<i64: 2, 1>, scalar_prefetch = 0 : i64, scratch_operands = 1 : i64, tpu.core_type = #tpu.core_type<tc>, window_params = [{transform_indices = @transform_0, window_bounds = array<i64: 128, 128>}, {pipeline_mode = #tpu.pipeline_mode<synchronous>, transform_indices = @transform_1, window_bounds = array<i64: 128, 128>}, {pipeline_mode = #tpu.pipeline_mode<synchronous>, transform_indices = @transform_2, window_bounds = array<i64: 128, 128>}, {pipeline_mode = #tpu.pipeline_mode<synchronous>, transform_indices = @transform_3, window_bounds = array<i64: 128, 128>}, {transform_indices = @transform_4, window_bounds = array<i64: 128, 128>}]} {
    %c128_i32 = arith.constant 128 : i32
    %0 = arith.muli %arg1, %c128_i32 : i32
    %1 = tpu.assume_multiple %0, 128 : i32
    %c0_i32 = arith.constant 0 : i32
    %2 = arith.cmpi eq, %arg0, %c0_i32 : i32
    %3 = arith.extui %2 : i1 to i32
    %c0_i32_0 = arith.constant 0 : i32
    %4 = arith.cmpi ne, %3, %c0_i32_0 : i32
    scf.if %4 {
      %c0 = arith.constant 0 : index
      %c0_2 = arith.constant 0 : index
      %8 = vector.load %arg2[%c0, %c0_2] : memref<128x128xbf16, #tpu.memory_space<vmem>>, vector<128x128xbf16>
      %c0_3 = arith.constant 0 : index
      %c0_4 = arith.constant 0 : index
      %9 = vector.load %arg3[%c0_3, %c0_4] : memref<128x128xbf16, #tpu.memory_space<vmem>>, vector<128x128xbf16>
      %cst = arith.constant dense<0.000000e+00> : vector<128x128xf32>
      %10 = tpu.matmul %8, %9, %cst {dimension_numbers = #tpu.dot_dimension_numbers<[1], [0], [0], [1], [0, 0, 1, 1], [], []>} : vector<128x128xbf16>, vector<128x128xbf16>, vector<128x128xf32> -> vector<128x128xf32>
      %11 = arith.truncf %10 : vector<128x128xf32> to vector<128x128xbf16>
      %c0_5 = arith.constant 0 : index
      %c0_6 = arith.constant 0 : index
      %12 = vector.load %arg4[%c0_5, %c0_6] : memref<128x128xbf16, #tpu.memory_space<vmem>>, vector<128x128xbf16>
      %cst_7 = arith.constant dense<0.000000e+00> : vector<128x128xf32>
      %13 = tpu.matmul %11, %12, %cst_7 {dimension_numbers = #tpu.dot_dimension_numbers<[1], [0], [0], [1], [0, 0, 1, 1], [], []>} : vector<128x128xbf16>, vector<128x128xbf16>, vector<128x128xf32> -> vector<128x128xf32>
      %cst_8 = arith.constant 0.000000e+00 : f32
      %14 = vector.broadcast %cst_8 : f32 to vector<128x128xf32>
      %15 = arith.maximumf %13, %14 : vector<128x128xf32>
      %16 = arith.truncf %15 : vector<128x128xf32> to vector<128x128xbf16>
      %17 = arith.index_cast %1 : i32 to index
      %c0_9 = arith.constant 0 : index
      %18 = vector.load %arg7[%17, %c0_9] : memref<128x128xbf16, #tpu.memory_space<vmem>>, vector<128x128xbf16>
      tpu.vector_store %arg7[%17, %c0_9], %16 {strides = array<i32>} : memref<128x128xbf16, #tpu.memory_space<vmem>>, vector<128x128xbf16>,
    } else {
    }
    %c1_i32 = arith.constant 1 : i32
    %5 = arith.cmpi eq, %arg0, %c1_i32 : i32
    %6 = arith.extui %5 : i1 to i32
    %c0_i32_1 = arith.constant 0 : i32
    %7 = arith.cmpi ne, %6, %c0_i32_1 : i32
    scf.if %7 {
      %c0 = arith.constant 0 : index
      %c0_2 = arith.constant 0 : index
      %8 = vector.load %arg2[%c0, %c0_2] : memref<128x128xbf16, #tpu.memory_space<vmem>>, vector<128x128xbf16>
      %c0_3 = arith.constant 0 : index
      %c0_4 = arith.constant 0 : index
      %9 = vector.load %arg7[%c0_3, %c0_4] : memref<128x128xbf16, #tpu.memory_space<vmem>>, vector<128x128xbf16>
      %cst = arith.constant dense<0.000000e+00> : vector<128x128xf32>
      %10 = tpu.matmul %8, %9, %cst {dimension_numbers = #tpu.dot_dimension_numbers<[1], [0], [0], [1], [0, 0, 1, 1], [], []>} : vector<128x128xbf16>, vector<128x128xbf16>, vector<128x128xf32> -> vector<128x128xf32>
      %11 = arith.truncf %10 : vector<128x128xf32> to vector<128x128xbf16>
      %c0_5 = arith.constant 0 : index
      %c0_6 = arith.constant 0 : index
      %12 = vector.load %arg5[%c0_5, %c0_6] : memref<128x128xbf16, #tpu.memory_space<vmem>>, vector<128x128xbf16>
      %cst_7 = arith.constant dense<0.000000e+00> : vector<128x128xf32>
      %13 = tpu.matmul %11, %12, %cst_7 {dimension_numbers = #tpu.dot_dimension_numbers<[1], [0], [0], [1], [0, 0, 1, 1], [], []>} : vector<128x128xbf16>, vector<128x128xbf16>, vector<128x128xf32> -> vector<128x128xf32>
      %c0_8 = arith.constant 0 : index
      %c0_9 = arith.constant 0 : index
      %14 = vector.load %arg6[%c0_8, %c0_9] : memref<128x128xf32, #tpu.memory_space<vmem>>, vector<128x128xf32>
      tpu.vector_store %arg6[%c0_8, %c0_9], %13 {strides = array<i32>} : memref<128x128xf32, #tpu.memory_space<vmem>>, vector<128x128xf32>,
    } else {
    }
    return
  }
  func.func @transform_0(%arg0: i32, %arg1: i32) -> (i32, i32) {
    %c0_i32 = arith.constant 0 : i32
    %c0_i32_0 = arith.constant 0 : i32
    return %arg1, %c0_i32 : i32, i32
  }
  func.func @transform_1(%arg0: i32, %arg1: i32) -> (i32, i32) {
    %c0_i32 = arith.constant 0 : i32
    %c0_i32_0 = arith.constant 0 : i32
    %c0_i32_1 = arith.constant 0 : i32
    return %c0_i32, %c0_i32_0 : i32, i32
  }
  func.func @transform_2(%arg0: i32, %arg1: i32) -> (i32, i32) {
    %c0_i32 = arith.constant 0 : i32
    %c0_i32_0 = arith.constant 0 : i32
    %c0_i32_1 = arith.constant 0 : i32
    return %c0_i32, %c0_i32_0 : i32, i32
  }
  func.func @transform_3(%arg0: i32, %arg1: i32) -> (i32, i32) {
    %c0_i32 = arith.constant 0 : i32
    %c0_i32_0 = arith.constant 0 : i32
    %c0_i32_1 = arith.constant 0 : i32
    return %c0_i32, %c0_i32_0 : i32, i32
  }
  func.func @transform_4(%arg0: i32, %arg1: i32) -> (i32, i32) {
    %0 = arith.muli %arg0, %arg1 : i32
    %c0_i32 = arith.constant 0 : i32
    %c0_i32_0 = arith.constant 0 : i32
    return %0, %c0_i32 : i32, i32
  }
}

</mosaic_0001>

<bundles_post_ra>
// kernel: tpu_custom_call.1
= control target key start
LH: loop header
LB: loop body
LE: loop exit
PB: predicated region body
PF: predicated region fallthrough
CT: control target
= control target key end

     0   :  { %9 = vsyncpa [#allocation4], 0  ;;  %s1943_s0 = inlined_call_operand.hbm [shape: bf16[128,128], index: 0, kind: input, shape index: {}]   ;;  %s1944_s1 = inlined_call_operand.hbm [shape: bf16[128,128], index: 1, kind: input, shape index: {}]   ;;  %s1945_s2 = inlined_call_operand.hbm [shape: bf16[128,128], index: 2, kind: input, shape index: {}]   ;;  %s1946_s3 = inlined_call_operand.hbm [shape: bf16[128,128], index: 3, kind: input, shape index: {}]   ;;  %s1947_s4 = inlined_call_operand.hbm [shape: f32[128,128], index: 4, kind: output, shape index: {}]  }
   0x1   :  { %10 = vsyncpa [#allocation7], 0 }
   0x2   :  { %11 = vsyncpa [#allocation10], 0 }
   0x3   :  { %12 = vsyncpa [#allocation5], 0 }
   0x4   :  { %14 = vsyncpa [#allocation5 + $0x1], 0  ;;  %s1755_s15 = smov 0   ;;  %s1757_s16 = smov 0  }
   0x5   :  { %s1759_s17 = smov 0  }
   0x6 LB: > { %s1172_s18 = sadd.s32 4294967295, %s1719_s17   ;;  %s1173_s19 = sadd.s32 4294967294, %s1719_s17   ;;  %s1719_s17 = sphi %s1759_s17, %s20_s17   ;;  %s1715_s16 = sphi %s1757_s16, %s1961_s16   ;;  %s1711_s15 = sphi %s1755_s15, %s1960_s15  }
   0x7   : > { %p1174_p0 = scmp.ge.s32.totalorder %s1719_s17, 1  ;;  %p154_p1 = scmp.lt.s32.totalorder %s1719_s17, 3 }
   0x8   : > { %p1776_p2 = scmp.eq.s32.totalorder %s1172_s18, 0  ;;  %s1721_s22 = smov [#allocation6]  }
   0x9   : > { %p1780_p3 = pnand %p1174_p0, %p154_p1  ;;  %s182_s23 = sshll.u32 %s1721_s22, 4  ;;  %s183_s23 = int_to_ptr.vmem [resolvable:$true] %s182_s23 }
   0xa   : > { %s1951_s20 = scalar_select %p1776_p2, 1, 0 }
   0xb   : > { %s1952_s21 = scalar_select %p1780_p3, 1, 0 }
   0xc   : > { %p1442_p4 = pneg %p1780_p3  ;;  %s32_s25 = sadd.s32 1, %s1715_s16 }
   0xd   : > { %p1793_p6 = scmp.ge.s32.totalorder %s32_s25, 2  ;;  %s1543_s29 = scalar_lea.hbm %s1944_s1, 1024 }
   0xe   : > { %p1788_p5 = pnand %p1776_p2, %p1442_p4  ;;  %p1544_p7 = scmp.ne.s32.totalorder %s1944_s1, %s1543_s29 }
   0xf   : > { %s1954_s26 = scalar_select %p1793_p6, 1, 0 }
  0x10   : > { %p1805_p8 = pneg %p1788_p5  ;;  %p1550_p11 = scmp.lt.u32.totalorder %s1543_s29, %s1944_s1 }
  0x12   : > { %p1546_p9 = pnand %p1805_p8, %p1544_p7 }
  0x14   : > { %p1547_p10 = pneg %p1546_p9 }
  0x16   : > { %p1552_p12 = pnand %p1550_p11, %p1547_p10 }
  0x18   : > { %1555 = shalt.err (!%p1552_p12)
}
  0x19   : > { %s1556_s9 = scalar_lea.vmem %s183_s23, 1024  ;;  %p1564_p4 = scmp.lt.s32.totalorder %s183_s23, %s183_s23 }
  0x1a   : > { %p1557_p13 = scmp.ne.s32.totalorder %s183_s23, %s1556_s9  ;;  %p1565_p2 = scmp.lt.s32.totalorder %s1556_s9, %s1556_s9 }
  0x1c   : > { %p1559_p0 = pnand %p1557_p13, %p1805_p8  ;;  %p1566_p3 = por %p1565_p2, %p1564_p4 }
  0x1e   : > { %p1560_p1 = pneg %p1559_p0 }
  0x20   : > { %p1567_p6 = pnand %p1566_p3, %p1560_p1 }
  0x22   : > { %1570 = shalt.err (!%p1567_p6)
}
  0x23   : > { %s1722_s10 = smov 64   ;;  %s1723_s11 = smov 4  }
  0x24   : > { %1448 = dma.hbm_to_vmem [thread:$0]  (!%p1788_p5), %s1944_s1, 1024, %s183_s23, [#allocation7], %s1722_s10, %s1722_s10, %s1723_s11  }
  0x25   : > { %p1956_p7 = scmp.ne.s32.totalorder %s1954_s26, 0  ;;  %s1724_s14 = smov [#allocation3]  }
  0x26   : > { %s169_s22 = sshll.u32 %s1724_s14, 4  ;;  %s1725_s27 = smov [#allocation8]   ;;  %s170_s22 = int_to_ptr.vmem [resolvable:$true] %s169_s22 }
  0x27   : > { %s1963_s25 = smov (%p1956_p7, %s32_s25), 0  ;;  %s195_s28 = sshll.u32 %s1725_s27, 4  ;;  %s196_s28 = int_to_ptr.vmem [resolvable:$true] %s195_s28 }
  0x28   : > { %s1571_s5 = scalar_lea.hbm %s1943_s0, 1024 }
  0x29   : > { %p1572_p2 = scmp.ne.s32.totalorder %s1943_s0, %s1571_s5  ;;  %p1578_p9 = scmp.lt.u32.totalorder %s1571_s5, %s1943_s0 }
  0x2b   : > { %p1574_p3 = pnand %p1572_p2, %p1805_p8 }
  0x2d   : > { %p1575_p6 = pneg %p1574_p3 }
  0x2f   : > { %p1580_p10 = pnand %p1578_p9, %p1575_p6 }
  0x31   : > { %1583 = shalt.err (!%p1580_p10)
}
  0x32   : > { %s1584_s9 = scalar_lea.vmem %s170_s22, 1024  ;;  %p1592_p0 = scmp.lt.s32.totalorder %s170_s22, %s170_s22 }
  0x33   : > { %p1585_p11 = scmp.ne.s32.totalorder %s170_s22, %s1584_s9  ;;  %p1593_p1 = scmp.lt.s32.totalorder %s1584_s9, %s1584_s9 }
  0x35   : > { %p1587_p12 = pnand %p1585_p11, %p1805_p8  ;;  %p1594_p4 = por %p1593_p1, %p1592_p0 }
  0x37   : > { %p1588_p13 = pneg %p1587_p12 }
  0x39   : > { %p1595_p7 = pnand %p1594_p4, %p1588_p13 }
  0x3b   : > { %1598 = shalt.err (!%p1595_p7)
}
  0x3c   : > { %1445 = dma.hbm_to_vmem [thread:$0]  (!%p1788_p5), %s1943_s0, 1024, %s170_s22, [#allocation4], %s1722_s10, %s1722_s10, %s1723_s11  }
  0x3d   : > { %s1599_s29 = scalar_lea.hbm %s1945_s2, 1024 }
  0x3e   : > { %p1600_p2 = scmp.ne.s32.totalorder %s1945_s2, %s1599_s29  ;;  %p1606_p9 = scmp.lt.u32.totalorder %s1599_s29, %s1945_s2 }
  0x40   : > { %p1602_p3 = pnand %p1600_p2, %p1805_p8 }
  0x42   : > { %p1603_p6 = pneg %p1602_p3 }
  0x44   : > { %p1608_p10 = pnand %p1606_p9, %p1603_p6 }
  0x46   : > { %1611 = shalt.err (!%p1608_p10)
}
  0x47   : > { %s1612_s23 = scalar_lea.vmem %s196_s28, 1024  ;;  %p1620_p0 = scmp.lt.s32.totalorder %s196_s28, %s196_s28 }
  0x48   : > { %p1613_p11 = scmp.ne.s32.totalorder %s196_s28, %s1612_s23  ;;  %p1621_p1 = scmp.lt.s32.totalorder %s1612_s23, %s1612_s23 }
  0x4a   : > { %p1615_p12 = pnand %p1613_p11, %p1805_p8  ;;  %p1622_p4 = por %p1621_p1, %p1620_p0 }
  0x4c   : > { %p1616_p13 = pneg %p1615_p12 }
  0x4e   : > { %p1623_p7 = pnand %p1622_p4, %p1616_p13 }
  0x50   : > { %1626 = shalt.err (!%p1623_p7)
}
  0x51   : > { %1451 = dma.hbm_to_vmem [thread:$0]  (!%p1788_p5), %s1945_s2, 1024, %s196_s28, [#allocation7], %s1722_s10, %s1722_s10, %s1723_s11  }
  0x52   : > { %s1726_s9 = smov [#allocation9]   ;;  %s1627_s27 = scalar_lea.hbm %s1946_s3, 1024 }
  0x53   : > { %s208_s12 = sshll.u32 %s1726_s9, 4  ;;  %p1628_p2 = scmp.ne.s32.totalorder %s1946_s3, %s1627_s27  ;;  %s209_s12 = int_to_ptr.vmem [resolvable:$true] %s208_s12 }
  0x54   : > { %p1634_p9 = scmp.lt.u32.totalorder %s1627_s27, %s1946_s3 }
  0x55   : > { %p1630_p3 = pnand %p1628_p2, %p1805_p8 }
  0x57   : > { %p1631_p6 = pneg %p1630_p3 }
  0x59   : > { %p1636_p10 = pnand %p1634_p9, %p1631_p6 }
  0x5b   : > { %1639 = shalt.err (!%p1636_p10)
}
  0x5c   : > { %s1640_s28 = scalar_lea.vmem %s209_s12, 1024  ;;  %p1648_p0 = scmp.lt.s32.totalorder %s209_s12, %s209_s12 }
  0x5d   : > { %p1641_p11 = scmp.ne.s32.totalorder %s209_s12, %s1640_s28  ;;  %p1649_p1 = scmp.lt.s32.totalorder %s1640_s28, %s1640_s28 }
  0x5f   : > { %p1643_p12 = pnand %p1641_p11, %p1805_p8  ;;  %p1650_p4 = por %p1649_p1, %p1648_p0 }
  0x61   : > { %p1644_p13 = pneg %p1643_p12 }
  0x63   : > { %p1651_p7 = pnand %p1650_p4, %p1644_p13 }
  0x65   : > { %1654 = shalt.err (!%p1651_p7)
}
  0x66   : > { %1454 = dma.hbm_to_vmem [thread:$0]  (!%p1788_p5), %s1946_s3, 1024, %s209_s12, [#allocation10], %s1722_s10, %s1722_s10, %s1723_s11  }
  0x67   : > { %p1957_p2 = scmp.ne.s32.totalorder %s1952_s21, 0 }
  0x68   : > { %p1958_p8 = scmp.ne.s32.totalorder (!%p1957_p2), %s1951_s20, 0 }
  0x69   : > { %224 = sbr.rel (%p1957_p2) target bundleno = 1129 (0x469), region = 36 }
  0x70   : > { %1694 = dma.done.wait (%p1958_p8), [#allocation4], 1024  }
  0x71   : > { %1696 = vsyncadd (%p1958_p8), [#allocation4], 4294966272 }
  0x72   : > { %1698 = dma.done.wait (%p1958_p8), [#allocation7], 2048  }
  0x73   : > { %1700 = vsyncadd (%p1958_p8), [#allocation7], 4294965248 }
  0x74   : > { %1702 = dma.done.wait (%p1958_p8), [#allocation10], 1024  }
  0x75   : > { %1704 = vsyncadd (%p1958_p8), [#allocation10], 4294966272  ;;  %p1184_p5 = scmp.ne.s32.totalorder %s1711_s15, 0 }
  0x76   : > { %v1503_v0 = vld [vmem:[#allocation6] sm:$0xff] (!%p1184_p5)   ;;  %v1504_v1 = vld [vmem:[#allocation6 + $0x8] sm:$0xff] (!%p1184_p5)   ;;  %v1505_v2 = vld [vmem:[#allocation6 + $0x10] sm:$0xff] (!%p1184_p5)  }
  0x77   : > { %265 = sbr.rel (%p1184_p5) target bundleno = 613 (0x265), region = 56  ;;  %1294 = vmatprep.subr.bf16.mxu0 (!%p1184_p5), %v1503_v0  ;;  %v1506_v3 = vld [vmem:[#allocation6 + $0x18] sm:$0xff] (!%p1184_p5)   ;;  %v1511_v4 = vld [vmem:[#allocation3] sm:$0xff] (!%p1184_p5)   ;;  %v1508_v6 = vld [vmem:[#allocation6 + $0x28] sm:$0xff] (!%p1184_p5)  }
  0x78   : > { %1295 = vmatpush3.bf16.msra.mxu0 (!%p1184_p5), %v1503_v0  ;;  %1310 = vmatprep.mubr.bf16.mxu0 (!%p1184_p5), %v1511_v4  ;;  %v1507_v5 = vld [vmem:[#allocation6 + $0x20] sm:$0xff] (!%p1184_p5)   ;;  %v1520_v8 = vld [vmem:[#allocation8 + $0x8] sm:$0xff] (!%p1184_p5)   ;;  %v1509_v9 = vld [vmem:[#allocation6 + $0x30] sm:$0xff] (!%p1184_p5)  }
  0x79   : > { %1296 = vmatprep.subr.bf16.mxu0 (!%p1184_p5), %v1504_v1  ;;  %v1519_v7 = vld [vmem:[#allocation8] sm:$0xff] (!%p1184_p5)   ;;  %v1521_v10 = vld [vmem:[#allocation8 + $0x10] sm:$0xff] (!%p1184_p5)   ;;  %v1510_v11 = vld [vmem:[#allocation6 + $0x38] sm:$0xff] (!%p1184_p5)  }
  0x7a   : > { %1326 = vmatprep.subr.bf16.mxu1 (!%p1184_p5), %v1519_v7  ;;  %v1522_v12 = vld [vmem:[#allocation8 + $0x18] sm:$0xff] (!%p1184_p5)   ;;  %v1523_v13 = vld [vmem:[#allocation8 + $0x20] sm:$0xff] (!%p1184_p5)   ;;  %v1512_v14 = vld [vmem:[#allocation3 + $0x8] sm:$0xff] (!%p1184_p5)  }
  0x7b   : > { %1327 = vmatpush3.bf16.msra.mxu1 (!%p1184_p5), %v1519_v7  ;;  %v1513_v15 = vld [vmem:[#allocation3 + $0x10] sm:$0xff] (!%p1184_p5)   ;;  %v1524_v16 = vld [vmem:[#allocation8 + $0x28] sm:$0xff] (!%p1184_p5)   ;;  %v1514_v18 = vld [vmem:[#allocation3 + $0x18] sm:$0xff] (!%p1184_p5)  }
  0x7c   : > { %1297 = vmatpush3.bf16.msra.mxu0 (!%p1184_p5), %v1504_v1  ;;  %1328 = vmatprep.subr.bf16.mxu1 (!%p1184_p5), %v1520_v8  ;;  %v1525_v17 = vld [vmem:[#allocation8 + $0x30] sm:$0xff] (!%p1184_p5)   ;;  %v1515_v19 = vld [vmem:[#allocation3 + $0x20] sm:$0xff] (!%p1184_p5)   ;;  %v1516_v20 = vld [vmem:[#allocation3 + $0x28] sm:$0xff] (!%p1184_p5)  }
  0x7d   : > { %1298 = vmatprep.subr.bf16.mxu0 (!%p1184_p5), %v1505_v2  ;;  %v1517_v21 = vld [vmem:[#allocation3 + $0x30] sm:$0xff] (!%p1184_p5)   ;;  %v1518_v22 = vld [vmem:[#allocation3 + $0x38] sm:$0xff] (!%p1184_p5)  }
  0x7e   : > { %v1526_v23 = vld [vmem:[#allocation8 + $0x38] sm:$0xff]  }
  0x7f   : > { %1329 = vmatpush3.bf16.msra.mxu1 %v1520_v8 }
  0x80   : > { %1299 = vmatpush3.bf16.msra.mxu0 %v1505_v2  ;;  %1330 = vmatprep.subr.bf16.mxu1 %v1521_v10 }
  0x81   : > { %1300 = vmatprep.subr.bf16.mxu0 %v1506_v3 }
  0x83   : > { %1331 = vmatpush3.bf16.msra.mxu1 %v1521_v10 }
  0x84   : > { %1301 = vmatpush3.bf16.msra.mxu0 %v1506_v3  ;;  %1332 = vmatprep.subr.bf16.mxu1 %v1522_v12 }
  0x85   : > { %1302 = vmatprep.subr.bf16.mxu0 %v1507_v5 }
  0x87   : > { %1333 = vmatpush3.bf16.msra.mxu1 %v1522_v12 }
  0x88   : > { %1303 = vmatpush3.bf16.msra.mxu0 %v1507_v5  ;;  %1334 = vmatprep.subr.bf16.mxu1 %v1523_v13 }
  0x89   : > { %1304 = vmatprep.subr.bf16.mxu0 %v1508_v6 }
  0x8b   : > { %1335 = vmatpush3.bf16.msra.mxu1 %v1523_v13 }
  0x8c   : > { %1305 = vmatpush3.bf16.msra.mxu0 %v1508_v6  ;;  %1336 = vmatprep.subr.bf16.mxu1 %v1524_v16 }
  0x8d   : > { %1306 = vmatprep.subr.bf16.mxu0 %v1509_v9 }
  0x8f   : > { %1337 = vmatpush3.bf16.msra.mxu1 %v1524_v16 }
  0x90   : > { %1307 = vmatpush3.bf16.msra.mxu0 %v1509_v9  ;;  %1338 = vmatprep.subr.bf16.mxu1 %v1525_v17 }
  0x91   : > { %1308 = vmatprep.subr.bf16.mxu0 %v1510_v11 }
  0x93   : > { %1339 = vmatpush3.bf16.msra.mxu1 %v1525_v17 }
  0x94   : > { %1309 = vmatpush3.bf16.msra.mxu0 %v1510_v11  ;;  %1340 = vmatprep.subr.bf16.mxu1 %v1526_v23 }
  0x97   : > { %1311 = vmatmul.mubr.bf16.vlgmr.msra.gmra.mrb[0].mxu0 %v1512_v14  ;;  %1341 = vmatpush3.bf16.msra.mxu1 %v1526_v23 }
  0x98   : > { %1314 = vmatprep.mubr.bf16.mxu0 %v1513_v15 }
  0x9f   : > { %1315 = vmatmul.mubr.bf16.gmra.mrb[4].mxu0 %v1514_v18 }
  0xa0   : > { %1318 = vmatprep.mubr.bf16.mxu0 %v1515_v19 }
  0xa7   : > { %1319 = vmatmul.mubr.bf16.gmra.mrb[8].mxu0 %v1516_v20 }
  0xa8   : > { %1322 = vmatprep.mubr.bf16.mxu0 %v1517_v21 }
  0xaf   : > { %1323 = vmatmul.mubr.bf16.gmra.mrb[12].mxu0 %v1518_v22 }
 0x16a   : > { %v1312_v24 = vpop.f32.mrb[0].mxu0 }
 0x16b   : > { %v428_v25 = vpop.f32.mrb[1].mxu0 }
 0x16c   : > { %v1313_v26 = vpop.f32.mrb[2].mxu0 }
 0x16d   : > { %v492_v27 = vpack.c.bf16 %v1313_v26, %v1312_v24  ;;  %v431_v28 = vpop.f32.mrb[3].mxu0 }
 0x16e   : > { %v491_v29 = vpack.c.bf16 %v431_v28, %v428_v25 }
 0x170   : > { %1342 = vmatprep.mubr.bf16.mxu1 %v491_v29 }
 0x171   : > { %1343 = vmatmul.mubr.bf16.vlgmr.msra.gmra.mrb[0].mxu1 %v492_v27 }
 0x172   : > { %v1316_v30 = vpop.f32.mrb[4].mxu0 }
 0x173   : > { %v444_v31 = vpop.f32.mrb[5].mxu0 }
 0x174   : > { %v1317_v32 = vpop.f32.mrb[6].mxu0 }
 0x175   : > { %v494_v33 = vpack.c.bf16 %v1317_v32, %v1316_v30  ;;  %v447_v34 = vpop.f32.mrb[7].mxu0 }
 0x176   : > { %v493_v35 = vpack.c.bf16 %v447_v34, %v444_v31 }
 0x178   : > { %1346 = vmatprep.mubr.bf16.mxu1 %v493_v35 }
 0x179   : > { %1347 = vmatmul.mubr.bf16.gmra.mrb[4].mxu1 %v494_v33 }
 0x17a   : > { %v1320_v36 = vpop.f32.mrb[8].mxu0 }
 0x17b   : > { %v460_v37 = vpop.f32.mrb[9].mxu0 }
 0x17c   : > { %v1321_v38 = vpop.f32.mrb[10].mxu0 }
 0x17d   : > { %v496_v39 = vpack.c.bf16 %v1321_v38, %v1320_v36  ;;  %v463_v40 = vpop.f32.mrb[11].mxu0 }
 0x17e   : > { %v495_v41 = vpack.c.bf16 %v463_v40, %v460_v37 }
 0x180   : > { %1350 = vmatprep.mubr.bf16.mxu1 %v495_v41 }
 0x181   : > { %1351 = vmatmul.mubr.bf16.gmra.mrb[8].mxu1 %v496_v39 }
 0x182   : > { %v1324_v42 = vpop.f32.mrb[12].mxu0 }
 0x183   : > { %v476_v43 = vpop.f32.mrb[13].mxu0 }
 0x184   : > { %v1325_v44 = vpop.f32.mrb[14].mxu0 }
 0x185   : > { %v498_v45 = vpack.c.bf16 %v1325_v44, %v1324_v42  ;;  %v479_v46 = vpop.f32.mrb[15].mxu0 }
 0x186   : > { %v497_v47 = vpack.c.bf16 %v479_v46, %v476_v43 }
 0x188   : > { %1354 = vmatprep.mubr.bf16.mxu1 %v497_v47 }
 0x189   : > { %1355 = vmatmul.mubr.bf16.gmra.mrb[12].mxu1 %v498_v45 }
 0x244   : > { %v1344_v48 = vpop.f32.mrb[0].mxu1 }
 0x245   : > { %v597_v49 = vpop.f32.mrb[1].mxu1  ;;  %v662_v51 = vmax.f32 %v1344_v48, 0.0 }
 0x246   : > { %v1345_v50 = vpop.f32.mrb[2].mxu1  ;;  %v660_v54 = vmax.f32 %v597_v49, 0.0 }
 0x247   : > { %v663_v52 = vmax.f32 %v1345_v50, 0.0  ;;  %v600_v53 = vpop.f32.mrb[3].mxu1 }
 0x248   : > { %v661_v55 = vmax.f32 %v600_v53, 0.0 }
 0x249   : > { %v677_v56 = vpack.c.bf16 %v663_v52, %v662_v51 }
 0x24a   : > { %v676_v57 = vpack.c.bf16 %v661_v55, %v660_v54 }
 0x24b   : > { %689 = vst [vmem:[#allocation2 + $0x8] sm:$0xff] %v677_v56 }
 0x24c   : > { %688 = vst [vmem:[#allocation2] sm:$0xff] %v676_v57  ;;  %v1348_v58 = vpop.f32.mrb[4].mxu1 }
 0x24d   : > { %v613_v59 = vpop.f32.mrb[5].mxu1  ;;  %v666_v61 = vmax.f32 %v1348_v58, 0.0 }
 0x24e   : > { %v1349_v60 = vpop.f32.mrb[6].mxu1  ;;  %v664_v0 = vmax.f32 %v613_v59, 0.0 }
 0x24f   : > { %v667_v62 = vmax.f32 %v1349_v60, 0.0  ;;  %v616_v63 = vpop.f32.mrb[7].mxu1 }
 0x250   : > { %v665_v1 = vmax.f32 %v616_v63, 0.0 }
 0x251   : > { %v679_v2 = vpack.c.bf16 %v667_v62, %v666_v61 }
 0x252   : > { %v678_v3 = vpack.c.bf16 %v665_v1, %v664_v0 }
 0x253   : > { %691 = vst [vmem:[#allocation2 + $0x18] sm:$0xff] %v679_v2 }
 0x254   : > { %690 = vst [vmem:[#allocation2 + $0x10] sm:$0xff] %v678_v3  ;;  %v1352_v4 = vpop.f32.mrb[8].mxu1 }
 0x255   : > { %v629_v5 = vpop.f32.mrb[9].mxu1  ;;  %v670_v7 = vmax.f32 %v1352_v4, 0.0 }
 0x256   : > { %v1353_v6 = vpop.f32.mrb[10].mxu1  ;;  %v668_v10 = vmax.f32 %v629_v5, 0.0 }
 0x257   : > { %v671_v8 = vmax.f32 %v1353_v6, 0.0  ;;  %v632_v9 = vpop.f32.mrb[11].mxu1 }
 0x258   : > { %v669_v11 = vmax.f32 %v632_v9, 0.0 }
 0x259   : > { %v681_v12 = vpack.c.bf16 %v671_v8, %v670_v7 }
 0x25a   : > { %v680_v13 = vpack.c.bf16 %v669_v11, %v668_v10 }
 0x25b   : > { %693 = vst [vmem:[#allocation2 + $0x28] sm:$0xff] %v681_v12 }
 0x25c   : > { %692 = vst [vmem:[#allocation2 + $0x20] sm:$0xff] %v680_v13  ;;  %v1356_v14 = vpop.f32.mrb[12].mxu1 }
 0x25d   : > { %v645_v15 = vpop.f32.mrb[13].mxu1  ;;  %v674_v17 = vmax.f32 %v1356_v14, 0.0 }
 0x25e   : > { %v1357_v16 = vpop.f32.mrb[14].mxu1  ;;  %v672_v20 = vmax.f32 %v645_v15, 0.0 }
 0x25f   : > { %v675_v18 = vmax.f32 %v1357_v16, 0.0  ;;  %v648_v19 = vpop.f32.mrb[15].mxu1 }
 0x260   : > { %v673_v21 = vmax.f32 %v648_v19, 0.0 }
 0x261   : > { %v683_v22 = vpack.c.bf16 %v675_v18, %v674_v17 }
 0x262   : > { %v682_v23 = vpack.c.bf16 %v673_v21, %v672_v20 }
 0x263   : > { %695 = vst [vmem:[#allocation2 + $0x38] sm:$0xff] %v683_v22 }
 0x264   : > { %694 = vst [vmem:[#allocation2 + $0x30] sm:$0xff] %v682_v23 }
 0x265 PF: > { %p1209_p3 = scmp.ne.s32.totalorder %s1711_s15, 1 }
 0x266   : > { %v716_v24 = vld [vmem:[#allocation2] sm:$0xff] (!%p1209_p3)  ;;  %v717_v25 = vld [vmem:[#allocation2 + $0x8] sm:$0xff] (!%p1209_p3)  ;;  %v718_v27 = vld [vmem:[#allocation2 + $0x10] sm:$0xff] (!%p1209_p3) }
 0x267   : > { %699 = sbr.rel (%p1209_p3) target bundleno = 1105 (0x451), region = 60  ;;  %1358 = vmatprep.subr.bf16.mxu0 (!%p1209_p3), %v716_v24  ;;  %v1527_v26 = vld [vmem:[#allocation3] sm:$0xff] (!%p1209_p3)   ;;  %v719_v28 = vld [vmem:[#allocation2 + $0x18] sm:$0xff] (!%p1209_p3)  ;;  %v1536_v31 = vld [vmem:[#allocation9 + $0x8] sm:$0xff] (!%p1209_p3)  }
 0x268   : > { %1359 = vmatpush3.bf16.msra.mxu0 (!%p1209_p3), %v716_v24  ;;  %1374 = vmatprep.mubr.bf16.mxu0 (!%p1209_p3), %v1527_v26  ;;  %v720_v29 = vld [vmem:[#allocation2 + $0x20] sm:$0xff] (!%p1209_p3)  ;;  %v1537_v32 = vld [vmem:[#allocation9 + $0x10] sm:$0xff] (!%p1209_p3)   ;;  %v721_v33 = vld [vmem:[#allocation2 + $0x28] sm:$0xff] (!%p1209_p3) }
 0x269   : > { %1360 = vmatprep.subr.bf16.mxu0 (!%p1209_p3), %v717_v25  ;;  %v1535_v30 = vld [vmem:[#allocation9] sm:$0xff] (!%p1209_p3)   ;;  %v1538_v34 = vld [vmem:[#allocation9 + $0x18] sm:$0xff] (!%p1209_p3)   ;;  %v1540_v38 = vld [vmem:[#allocation9 + $0x28] sm:$0xff] (!%p1209_p3)  }
 0x26a   : > { %1390 = vmatprep.subr.bf16.mxu1 (!%p1209_p3), %v1535_v30  ;;  %v1539_v36 = vld [vmem:[#allocation9 + $0x20] sm:$0xff] (!%p1209_p3)   ;;  %v723_v37 = vld [vmem:[#allocation2 + $0x38] sm:$0xff] (!%p1209_p3)  ;;  %v1528_v39 = vld [vmem:[#allocation3 + $0x8] sm:$0xff] (!%p1209_p3)  }
 0x26b   : > { %1391 = vmatpush3.bf16.msra.mxu1 (!%p1209_p3), %v1535_v30  ;;  %v722_v35 = vld [vmem:[#allocation2 + $0x30] sm:$0xff] (!%p1209_p3)  ;;  %v1530_v42 = vld [vmem:[#allocation3 + $0x18] sm:$0xff] (!%p1209_p3)   ;;  %v1531_v43 = vld [vmem:[#allocation3 + $0x20] sm:$0xff] (!%p1209_p3)  }
 0x26c   : > { %1361 = vmatpush3.bf16.msra.mxu0 (!%p1209_p3), %v717_v25  ;;  %1392 = vmatprep.subr.bf16.mxu1 (!%p1209_p3), %v1536_v31  ;;  %v1529_v40 = vld [vmem:[#allocation3 + $0x10] sm:$0xff] (!%p1209_p3)   ;;  %v1532_v44 = vld [vmem:[#allocation3 + $0x28] sm:$0xff] (!%p1209_p3)   ;;  %v1534_v46 = vld [vmem:[#allocation3 + $0x38] sm:$0xff] (!%p1209_p3)  }
 0x26d   : > { %1362 = vmatprep.subr.bf16.mxu0 (!%p1209_p3), %v718_v27  ;;  %v1541_v41 = vld [vmem:[#allocation9 + $0x30] sm:$0xff] (!%p1209_p3)   ;;  %v1542_v47 = vld [vmem:[#allocation9 + $0x38] sm:$0xff] (!%p1209_p3)  }
 0x26e   : > { %v1533_v45 = vld [vmem:[#allocation3 + $0x30] sm:$0xff]  }
 0x26f   : > { %1393 = vmatpush3.bf16.msra.mxu1 %v1536_v31 }
 0x270   : > { %1363 = vmatpush3.bf16.msra.mxu0 %v718_v27  ;;  %1394 = vmatprep.subr.bf16.mxu1 %v1537_v32 }
 0x271   : > { %1364 = vmatprep.subr.bf16.mxu0 %v719_v28 }
 0x273   : > { %1395 = vmatpush3.bf16.msra.mxu1 %v1537_v32 }
 0x274   : > { %1365 = vmatpush3.bf16.msra.mxu0 %v719_v28  ;;  %1396 = vmatprep.subr.bf16.mxu1 %v1538_v34 }
 0x275   : > { %1366 = vmatprep.subr.bf16.mxu0 %v720_v29 }
 0x277   : > { %1397 = vmatpush3.bf16.msra.mxu1 %v1538_v34 }
 0x278   : > { %1367 = vmatpush3.bf16.msra.mxu0 %v720_v29  ;;  %1398 = vmatprep.subr.bf16.mxu1 %v1539_v36 }
 0x279   : > { %1368 = vmatprep.subr.bf16.mxu0 %v721_v33 }
 0x27b   : > { %1399 = vmatpush3.bf16.msra.mxu1 %v1539_v36 }
 0x27c   : > { %1369 = vmatpush3.bf16.msra.mxu0 %v721_v33  ;;  %1400 = vmatprep.subr.bf16.mxu1 %v1540_v38 }
 0x27d   : > { %1370 = vmatprep.subr.bf16.mxu0 %v722_v35 }
 0x27f   : > { %1401 = vmatpush3.bf16.msra.mxu1 %v1540_v38 }
 0x280   : > { %1371 = vmatpush3.bf16.msra.mxu0 %v722_v35  ;;  %1402 = vmatprep.subr.bf16.mxu1 %v1541_v41 }
 0x281   : > { %1372 = vmatprep.subr.bf16.mxu0 %v723_v37 }
 0x283   : > { %1403 = vmatpush3.bf16.msra.mxu1 %v1541_v41 }
 0x284   : > { %1373 = vmatpush3.bf16.msra.mxu0 %v723_v37  ;;  %1404 = vmatprep.subr.bf16.mxu1 %v1542_v47 }
 0x287   : > { %1375 = vmatmul.mubr.bf16.vlgmr.msra.gmra.mrb[0].mxu0 %v1528_v39  ;;  %1405 = vmatpush3.bf16.msra.mxu1 %v1542_v47 }
 0x288   : > { %1378 = vmatprep.mubr.bf16.mxu0 %v1529_v40 }
 0x28f   : > { %1379 = vmatmul.mubr.bf16.gmra.mrb[4].mxu0 %v1530_v42 }
 0x290   : > { %1382 = vmatprep.mubr.bf16.mxu0 %v1531_v43 }
 0x297   : > { %1383 = vmatmul.mubr.bf16.gmra.mrb[8].mxu0 %v1532_v44 }
 0x298   : > { %1386 = vmatprep.mubr.bf16.mxu0 %v1533_v45 }
 0x29f   : > { %1387 = vmatmul.mubr.bf16.gmra.mrb[12].mxu0 %v1534_v46 }
 0x35a   : > { %v1376_v48 = vpop.f32.mrb[0].mxu0 }
 0x35b   : > { %v806_v49 = vpop.f32.mrb[1].mxu0 }
 0x35c   : > { %v1377_v50 = vpop.f32.mrb[2].mxu0 }
 0x35d   : > { %v870_v51 = vpack.c.bf16 %v1377_v50, %v1376_v48  ;;  %v809_v52 = vpop.f32.mrb[3].mxu0 }
 0x35e   : > { %v869_v53 = vpack.c.bf16 %v809_v52, %v806_v49 }
 0x360   : > { %1406 = vmatprep.mubr.bf16.mxu1 %v869_v53 }
 0x361   : > { %1407 = vmatmul.mubr.bf16.vlgmr.msra.gmra.mrb[0].mxu1 %v870_v51 }
 0x362   : > { %v1380_v54 = vpop.f32.mrb[4].mxu0 }
 0x363   : > { %v822_v55 = vpop.f32.mrb[5].mxu0 }
 0x364   : > { %v1381_v56 = vpop.f32.mrb[6].mxu0 }
 0x365   : > { %v872_v57 = vpack.c.bf16 %v1381_v56, %v1380_v54  ;;  %v825_v58 = vpop.f32.mrb[7].mxu0 }
 0x366   : > { %v871_v59 = vpack.c.bf16 %v825_v58, %v822_v55 }
 0x368   : > { %1410 = vmatprep.mubr.bf16.mxu1 %v871_v59 }
 0x369   : > { %1411 = vmatmul.mubr.bf16.gmra.mrb[4].mxu1 %v872_v57 }
 0x36a   : > { %v1384_v60 = vpop.f32.mrb[8].mxu0 }
 0x36b   : > { %v838_v61 = vpop.f32.mrb[9].mxu0 }
 0x36c   : > { %v1385_v62 = vpop.f32.mrb[10].mxu0 }
 0x36d   : > { %v874_v63 = vpack.c.bf16 %v1385_v62, %v1384_v60  ;;  %v841_v0 = vpop.f32.mrb[11].mxu0 }
 0x36e   : > { %v873_v1 = vpack.c.bf16 %v841_v0, %v838_v61 }
 0x370   : > { %1414 = vmatprep.mubr.bf16.mxu1 %v873_v1 }
 0x371   : > { %1415 = vmatmul.mubr.bf16.gmra.mrb[8].mxu1 %v874_v63 }
 0x372   : > { %v1388_v2 = vpop.f32.mrb[12].mxu0 }
 0x373   : > { %v854_v3 = vpop.f32.mrb[13].mxu0 }
 0x374   : > { %v1389_v4 = vpop.f32.mrb[14].mxu0 }
 0x375   : > { %v876_v5 = vpack.c.bf16 %v1389_v4, %v1388_v2  ;;  %v857_v6 = vpop.f32.mrb[15].mxu0 }
 0x376   : > { %v875_v7 = vpack.c.bf16 %v857_v6, %v854_v3 }
 0x378   : > { %1418 = vmatprep.mubr.bf16.mxu1 %v875_v7 }
 0x379   : > { %1419 = vmatmul.mubr.bf16.gmra.mrb[12].mxu1 %v876_v5 }
 0x434   : > { %v1408_v8 = vpop.f32.mrb[0].mxu1 }
 0x435   : > { %1040 = vst [vmem:[#allocation11 + $0x10] sm:$0xff] %v1408_v8  ;;  %v975_v9 = vpop.f32.mrb[1].mxu1 }
 0x436   : > { %1038 = vst [vmem:[#allocation11] sm:$0xff] %v975_v9  ;;  %v1409_v10 = vpop.f32.mrb[2].mxu1 }
 0x437   : > { %1041 = vst [vmem:[#allocation11 + $0x18] sm:$0xff] %v1409_v10  ;;  %v978_v11 = vpop.f32.mrb[3].mxu1 }
 0x438   : > { %1039 = vst [vmem:[#allocation11 + $0x8] sm:$0xff] %v978_v11 }
 0x43c   : > { %v1412_v12 = vpop.f32.mrb[4].mxu1 }
 0x43d   : > { %1044 = vst [vmem:[#allocation11 + $0x30] sm:$0xff] %v1412_v12  ;;  %v991_v13 = vpop.f32.mrb[5].mxu1 }
 0x43e   : > { %1042 = vst [vmem:[#allocation11 + $0x20] sm:$0xff] %v991_v13  ;;  %v1413_v14 = vpop.f32.mrb[6].mxu1 }
 0x43f   : > { %1045 = vst [vmem:[#allocation11 + $0x38] sm:$0xff] %v1413_v14  ;;  %v994_v15 = vpop.f32.mrb[7].mxu1 }
 0x440   : > { %1043 = vst [vmem:[#allocation11 + $0x28] sm:$0xff] %v994_v15 }
 0x444   : > { %v1416_v16 = vpop.f32.mrb[8].mxu1 }
 0x445   : > { %1048 = vst [vmem:[#allocation11 + $0x50] sm:$0xff] %v1416_v16  ;;  %v1007_v17 = vpop.f32.mrb[9].mxu1 }
 0x446   : > { %1046 = vst [vmem:[#allocation11 + $0x40] sm:$0xff] %v1007_v17  ;;  %v1417_v18 = vpop.f32.mrb[10].mxu1 }
 0x447   : > { %1049 = vst [vmem:[#allocation11 + $0x58] sm:$0xff] %v1417_v18  ;;  %v1010_v19 = vpop.f32.mrb[11].mxu1 }
 0x448   : > { %1047 = vst [vmem:[#allocation11 + $0x48] sm:$0xff] %v1010_v19 }
 0x44c   : > { %v1420_v20 = vpop.f32.mrb[12].mxu1 }
 0x44d   : > { %1052 = vst [vmem:[#allocation11 + $0x70] sm:$0xff] %v1420_v20  ;;  %v1023_v21 = vpop.f32.mrb[13].mxu1 }
 0x44e   : > { %1050 = vst [vmem:[#allocation11 + $0x60] sm:$0xff] %v1023_v21  ;;  %v1421_v22 = vpop.f32.mrb[14].mxu1 }
 0x44f   : > { %1053 = vst [vmem:[#allocation11 + $0x78] sm:$0xff] %v1421_v22  ;;  %v1026_v23 = vpop.f32.mrb[15].mxu1 }
 0x450   : > { %1051 = vst [vmem:[#allocation11 + $0x68] sm:$0xff] %v1026_v23 }
 0x451 PF: > { %p1909_p6 = scmp.eq.s32.totalorder %s1172_s18, 1  ;;  %s1727_s20 = smov [#allocation11]  }
 0x452   : > { %s1069_s21 = sshll.u32 %s1727_s20, 4  ;;  %s1070_s21 = int_to_ptr.vmem [resolvable:$true] %s1069_s21 }
 0x453   : > { %s1655_s24 = scalar_lea.vmem %s1070_s21, 2048  ;;  %s1661_s6 = scalar_lea.vmem %s1070_s21, 4096 }
 0x454   : > { %p1656_p9 = scmp.ne.s32.totalorder %s1070_s21, %s1655_s24  ;;  %p1662_p12 = scmp.lt.s32.totalorder %s1070_s21, %s1070_s21 }
 0x455   : > { %p1663_p13 = scmp.lt.s32.totalorder %s1661_s6, %s1655_s24 }
 0x456   : > { %p1657_p10 = pnand %p1656_p9, %p1909_p6 }
 0x457   : > { %p1664_p0 = por %p1663_p13, %p1662_p12 }
 0x458   : > { %p1658_p11 = pneg %p1657_p10 }
 0x45a   : > { %p1665_p1 = pnand %p1664_p0, %p1658_p11 }
 0x45c   : > { %1668 = shalt.err (!%p1665_p1)
}
 0x45d   : > { %s1669_s11 = scalar_lea.hbm %s1947_s4, 2048 }
 0x45e   : > { %p1670_p4 = scmp.ne.s32.totalorder %s1947_s4, %s1669_s11  ;;  %p1675_p8 = scmp.lt.u32.totalorder %s1669_s11, %s1947_s4 }
 0x460   : > { %p1671_p7 = pnand %p1670_p4, %p1909_p6 }
 0x462   : > { %p1672_p2 = pneg %p1671_p7 }
 0x464   : > { %p1677_p5 = pnand %p1675_p8, %p1672_p2 }
 0x466   : > { %1680 = shalt.err (!%p1677_p5)
}
 0x467   : > { %s1728_s13 = smov 128   ;;  %s1729_s14 = smov 8  }
 0x468   : > { %1439 = dma.vmem_to_hbm [thread:$0]  (%p1909_p6), %s1070_s21, 2048, %s1947_s4, [#allocation5], %s1728_s13, %s1728_s13, %s1729_s14  }
 0x469 PF: > { %p1468_p3 = scmp.ge.s32.totalorder %s1719_s17, 2  ;;  %p1469_p9 = scmp.eq.s32.totalorder %s1173_s19, 1 }
 0x46b   : > { %p1456_p10 = pnand %p1469_p9, %p1468_p3 }
 0x46d   : > { %1706 = dma.done.wait (!%p1456_p10), [#allocation5], 2048  }
 0x46e   : > { %1708 = vsyncadd (!%p1456_p10), [#allocation5], 4294965248  ;;  %s20_s17 = sadd.s32 1, %s1719_s17   ;;  %s1960_s15 = smov %s1715_s16 }
 0x46f   : > { %p17_p11 = scmp.ge.s32.totalorder %s20_s17, 4   ;;  %s1961_s16 = smov %s1963_s25 }
 0x471   :  { %19 = sbr.rel (!%p17_p11) target bundleno = 6 (0x6), region = 95 }
 0x478   :  { %1090 = vsyncpa [#allocation4], 1 }
 0x479   :  { %1092 = vsyncpa [#allocation4 + $0x1], 1 }
 0x47a   :  { %1093 = vsyncpa [#allocation7], 1 }
 0x47b   :  { %1094 = vsyncpa [#allocation10], 1 }
 0x47c   :  { %1095 = vsyncpa [#allocation5], 1 }
 0x47d   :  { %1097 = vsyncpa [#allocation5 + $0x1], 1 }

</bundles_post_ra>
